<compile_context>
chip_gen: v5e
topology: v5e:2x2
jax: 0.10.0
libtpu: 0.0.40
codegen_flags: <defaults>
</compile_context>

<pallas_src>
import jax
import jax.numpy as jnp
from jax.experimental import pallas as pl
from jax.experimental.pallas import tpu as pltpu

IN_CHANNELS = 4
DIMS = [IN_CHANNELS, 10, 6, 3, 6, 10, IN_CHANNELS]        # layer in/out sizes
ACTS = ("leaky", "leaky", "tanh", "leaky", "leaky", "tanh")
LANE = 128


def _leaky_relu(x, slope=0.01):
    return jnp.where(x > 0, x, slope * x)


def _layer(h, w, b, act):
    """One Linear+activation in batch-on-lanes layout.

    h: (in_f, TB) f32, w: (out_f, in_f), b: (out_f, 1).  Returns (out_f, TB).
    Unrolled as in_f broadcast-FMAs on the VPU (no MXU)."""
    out_f, in_f = w.shape
    acc = w[:, 0:1] * h[0:1, :]                   # (out_f,1)*(1,TB) -> (out_f,TB)
    for i in range(1, in_f):
        acc = acc + w[:, i:i + 1] * h[i:i + 1, :]
    acc = acc + b                                 # lane-broadcast bias, once per layer
    if act == "tanh":
        return jnp.tanh(acc)                      # EUP
    return _leaky_relu(acc)                       # VPU select


def linear_ae_kernel(x_ref,
                     w1, b1, w2, b2, w3, b3, w4, b4, w5, b5, w6, b6,
                     o_ref):
    h = x_ref[...].astype(jnp.float32)            # (IN_CHANNELS, TB), batch on lanes
    ws = (w1, w2, w3, w4, w5, w6)
    bs = (b1, b2, b3, b4, b5, b6)
    for w_ref, b_ref, act in zip(ws, bs, ACTS):
        h = _layer(h, w_ref[...], b_ref[...], act)
    o_ref[...] = h.astype(o_ref.dtype)            # lane-dense, unmasked stores


def linear_ae(x, params, *, tile_b=2048):
    """x: (B, IN_CHANNELS) f32.  params: list of (W, b), W (out_f, in_f), b (out_f, 1)."""
    B, F = x.shape
    assert F == IN_CHANNELS

    # Batch-on-lanes layout.
    xt = x.T                                       # (F, B)

    # Round batch to a lane multiple; pick the biggest tile <= tile_b.
    Bp = ((B + LANE - 1) // LANE) * LANE
    tb = min(tile_b, Bp)
    Bp = ((Bp + tb - 1) // tb) * tb                # multiple of the tile
    if Bp != B:
        xt = jnp.pad(xt, ((0, 0), (0, Bp - B)))

    flat = []
    for w, b in params:
        flat += [w, b]

    def full_spec(arr):
        return pl.BlockSpec(arr.shape, lambda i: (0, 0))

    in_specs = [pl.BlockSpec((F, tb), lambda i: (0, i))]
    in_specs += [full_spec(a) for a in flat]

    out_t = pl.pallas_call(
        linear_ae_kernel,
        out_shape=jax.ShapeDtypeStruct((F, Bp), x.dtype),
        grid_spec=pltpu.PrefetchScalarGridSpec(
            num_scalar_prefetch=0,
            grid=(Bp // tb,),
            in_specs=in_specs,
            out_specs=pl.BlockSpec((F, tb), lambda i: (0, i)),
        ),
        compiler_params=pltpu.CompilerParams(
            dimension_semantics=("parallel",)),
    )(xt, *flat)

    return out_t[:, :B].T                          # back to (B, F)


def init_params(key):
    """PyTorch nn.Linear-style init: W (out,in), b (out,1), U[-1/sqrt(in), 1/sqrt(in)]."""
    params = []
    for li in range(len(DIMS) - 1):
        fan_in, fan_out = DIMS[li], DIMS[li + 1]
        key, kw, kb = jax.random.split(key, 3)
        bound = 1.0 / jnp.sqrt(fan_in)
        w = jax.random.uniform(kw, (fan_out, fan_in), jnp.float32, -bound, bound)
        b = jax.random.uniform(kb, (fan_out, 1), jnp.float32, -bound, bound)
        params.append((w, b))
    return params


def linear_ae_ref(x, params):
    h = x
    for (w, b), act in zip(params, ACTS):
        h = h @ w.T + b[:, 0]
        h = jnp.tanh(h) if act == "tanh" else _leaky_relu(h)
    return h


if __name__ == "__main__":
    key = jax.random.PRNGKey(0)
    kx, kp = jax.random.split(key)
    x = jax.random.normal(kx, (16, IN_CHANNELS), jnp.float32)
    params = init_params(kp)

    out = linear_ae(x, params)
    out = jax.block_until_ready(out)

    ref = linear_ae_ref(x, params)
    assert out.shape == (16, IN_CHANNELS)
    assert jnp.allclose(out, ref, atol=1e-5, rtol=1e-5), "mismatch vs JAX reference"
    print("KERNEL_OK")
</pallas_src>

<mosaic_0001>
module attributes {stable_mosaic.version = 11 : i64} {
  func.func @linear_ae_kernel(%arg0: i32, %arg1: memref<4x128xf32, #tpu.memory_space<vmem>>, %arg2: memref<10x4xf32, #tpu.memory_space<vmem>>, %arg3: memref<10x1xf32, #tpu.memory_space<vmem>>, %arg4: memref<6x10xf32, #tpu.memory_space<vmem>>, %arg5: memref<6x1xf32, #tpu.memory_space<vmem>>, %arg6: memref<3x6xf32, #tpu.memory_space<vmem>>, %arg7: memref<3x1xf32, #tpu.memory_space<vmem>>, %arg8: memref<6x3xf32, #tpu.memory_space<vmem>>, %arg9: memref<6x1xf32, #tpu.memory_space<vmem>>, %arg10: memref<10x6xf32, #tpu.memory_space<vmem>>, %arg11: memref<10x1xf32, #tpu.memory_space<vmem>>, %arg12: memref<4x10xf32, #tpu.memory_space<vmem>>, %arg13: memref<4x1xf32, #tpu.memory_space<vmem>>, %arg14: memref<4x128xf32, #tpu.memory_space<vmem>>) attributes {dimension_semantics = [#tpu.dimension_semantics<parallel>], iteration_bounds = array<i64: 1>, scalar_prefetch = 0 : i64, scratch_operands = 0 : i64, tpu.core_type = #tpu.core_type<tc>, window_params = [{transform_indices = @transform_0, window_bounds = array<i64: 4, 128>}, {pipeline_mode = #tpu.pipeline_mode<synchronous>, transform_indices = @transform_1, window_bounds = array<i64: 10, 4>}, {pipeline_mode = #tpu.pipeline_mode<synchronous>, transform_indices = @transform_2, window_bounds = array<i64: 10, 1>}, {pipeline_mode = #tpu.pipeline_mode<synchronous>, transform_indices = @transform_3, window_bounds = array<i64: 6, 10>}, {pipeline_mode = #tpu.pipeline_mode<synchronous>, transform_indices = @transform_4, window_bounds = array<i64: 6, 1>}, {pipeline_mode = #tpu.pipeline_mode<synchronous>, transform_indices = @transform_5, window_bounds = array<i64: 3, 6>}, {pipeline_mode = #tpu.pipeline_mode<synchronous>, transform_indices = @transform_6, window_bounds = array<i64: 3, 1>}, {pipeline_mode = #tpu.pipeline_mode<synchronous>, transform_indices = @transform_7, window_bounds = array<i64: 6, 3>}, {pipeline_mode = #tpu.pipeline_mode<synchronous>, transform_indices = @transform_8, window_bounds = array<i64: 6, 1>}, {pipeline_mode = #tpu.pipeline_mode<synchronous>, transform_indices = @transform_9, window_bounds = array<i64: 10, 6>}, {pipeline_mode = #tpu.pipeline_mode<synchronous>, transform_indices = @transform_10, window_bounds = array<i64: 10, 1>}, {pipeline_mode = #tpu.pipeline_mode<synchronous>, transform_indices = @transform_11, window_bounds = array<i64: 4, 10>}, {pipeline_mode = #tpu.pipeline_mode<synchronous>, transform_indices = @transform_12, window_bounds = array<i64: 4, 1>}, {transform_indices = @transform_13, window_bounds = array<i64: 4, 128>}]} {
    %c0 = arith.constant 0 : index
    %c0_0 = arith.constant 0 : index
    %0 = vector.load %arg1[%c0, %c0_0] : memref<4x128xf32, #tpu.memory_space<vmem>>, vector<4x128xf32>
    %c0_1 = arith.constant 0 : index
    %c0_2 = arith.constant 0 : index
    %1 = vector.load %arg2[%c0_1, %c0_2] : memref<10x4xf32, #tpu.memory_space<vmem>>, vector<10x4xf32>
    %c0_3 = arith.constant 0 : index
    %c0_4 = arith.constant 0 : index
    %2 = vector.load %arg3[%c0_3, %c0_4] : memref<10x1xf32, #tpu.memory_space<vmem>>, vector<10x1xf32>
    %3 = vector.extract_strided_slice %1 {offsets = [0, 0], sizes = [10, 1], strides = [1, 1]} : vector<10x4xf32> to vector<10x1xf32>
    %4 = vector.extract_strided_slice %0 {offsets = [0, 0], sizes = [1, 128], strides = [1, 1]} : vector<4x128xf32> to vector<1x128xf32>
    %5 = vector.broadcast %3 : vector<10x1xf32> to vector<10x128xf32>
    %6 = vector.broadcast %4 : vector<1x128xf32> to vector<10x128xf32>
    %7 = arith.mulf %5, %6 : vector<10x128xf32>
    %8 = vector.extract_strided_slice %1 {offsets = [0, 1], sizes = [10, 1], strides = [1, 1]} : vector<10x4xf32> to vector<10x1xf32>
    %9 = vector.extract_strided_slice %0 {offsets = [1, 0], sizes = [1, 128], strides = [1, 1]} : vector<4x128xf32> to vector<1x128xf32>
    %10 = vector.broadcast %8 : vector<10x1xf32> to vector<10x128xf32>
    %11 = vector.broadcast %9 : vector<1x128xf32> to vector<10x128xf32>
    %12 = arith.mulf %10, %11 : vector<10x128xf32>
    %13 = arith.addf %7, %12 : vector<10x128xf32>
    %14 = vector.extract_strided_slice %1 {offsets = [0, 2], sizes = [10, 1], strides = [1, 1]} : vector<10x4xf32> to vector<10x1xf32>
    %15 = vector.extract_strided_slice %0 {offsets = [2, 0], sizes = [1, 128], strides = [1, 1]} : vector<4x128xf32> to vector<1x128xf32>
    %16 = vector.broadcast %14 : vector<10x1xf32> to vector<10x128xf32>
    %17 = vector.broadcast %15 : vector<1x128xf32> to vector<10x128xf32>
    %18 = arith.mulf %16, %17 : vector<10x128xf32>
    %19 = arith.addf %13, %18 : vector<10x128xf32>
    %20 = vector.extract_strided_slice %1 {offsets = [0, 3], sizes = [10, 1], strides = [1, 1]} : vector<10x4xf32> to vector<10x1xf32>
    %21 = vector.extract_strided_slice %0 {offsets = [3, 0], sizes = [1, 128], strides = [1, 1]} : vector<4x128xf32> to vector<1x128xf32>
    %22 = vector.broadcast %20 : vector<10x1xf32> to vector<10x128xf32>
    %23 = vector.broadcast %21 : vector<1x128xf32> to vector<10x128xf32>
    %24 = arith.mulf %22, %23 : vector<10x128xf32>
    %25 = arith.addf %19, %24 : vector<10x128xf32>
    %26 = vector.broadcast %2 : vector<10x1xf32> to vector<10x128xf32>
    %27 = arith.addf %25, %26 : vector<10x128xf32>
    %cst = arith.constant 0.000000e+00 : f32
    %28 = vector.broadcast %cst : f32 to vector<10x128xf32>
    %29 = arith.cmpf ogt, %27, %28 : vector<10x128xf32>
    %cst_5 = arith.constant 0.00999999977 : f32
    %30 = vector.broadcast %cst_5 : f32 to vector<10x128xf32>
    %31 = arith.mulf %30, %27 : vector<10x128xf32>
    %32 = arith.select %29, %27, %31 : vector<10x128xi1>, vector<10x128xf32>
    %c0_6 = arith.constant 0 : index
    %c0_7 = arith.constant 0 : index
    %33 = vector.load %arg4[%c0_6, %c0_7] : memref<6x10xf32, #tpu.memory_space<vmem>>, vector<6x10xf32>
    %c0_8 = arith.constant 0 : index
    %c0_9 = arith.constant 0 : index
    %34 = vector.load %arg5[%c0_8, %c0_9] : memref<6x1xf32, #tpu.memory_space<vmem>>, vector<6x1xf32>
    %35 = vector.extract_strided_slice %33 {offsets = [0, 0], sizes = [6, 1], strides = [1, 1]} : vector<6x10xf32> to vector<6x1xf32>
    %36 = vector.extract_strided_slice %32 {offsets = [0, 0], sizes = [1, 128], strides = [1, 1]} : vector<10x128xf32> to vector<1x128xf32>
    %37 = vector.broadcast %35 : vector<6x1xf32> to vector<6x128xf32>
    %38 = vector.broadcast %36 : vector<1x128xf32> to vector<6x128xf32>
    %39 = arith.mulf %37, %38 : vector<6x128xf32>
    %40 = vector.extract_strided_slice %33 {offsets = [0, 1], sizes = [6, 1], strides = [1, 1]} : vector<6x10xf32> to vector<6x1xf32>
    %41 = vector.extract_strided_slice %32 {offsets = [1, 0], sizes = [1, 128], strides = [1, 1]} : vector<10x128xf32> to vector<1x128xf32>
    %42 = vector.broadcast %40 : vector<6x1xf32> to vector<6x128xf32>
    %43 = vector.broadcast %41 : vector<1x128xf32> to vector<6x128xf32>
    %44 = arith.mulf %42, %43 : vector<6x128xf32>
    %45 = arith.addf %39, %44 : vector<6x128xf32>
    %46 = vector.extract_strided_slice %33 {offsets = [0, 2], sizes = [6, 1], strides = [1, 1]} : vector<6x10xf32> to vector<6x1xf32>
    %47 = vector.extract_strided_slice %32 {offsets = [2, 0], sizes = [1, 128], strides = [1, 1]} : vector<10x128xf32> to vector<1x128xf32>
    %48 = vector.broadcast %46 : vector<6x1xf32> to vector<6x128xf32>
    %49 = vector.broadcast %47 : vector<1x128xf32> to vector<6x128xf32>
    %50 = arith.mulf %48, %49 : vector<6x128xf32>
    %51 = arith.addf %45, %50 : vector<6x128xf32>
    %52 = vector.extract_strided_slice %33 {offsets = [0, 3], sizes = [6, 1], strides = [1, 1]} : vector<6x10xf32> to vector<6x1xf32>
    %53 = vector.extract_strided_slice %32 {offsets = [3, 0], sizes = [1, 128], strides = [1, 1]} : vector<10x128xf32> to vector<1x128xf32>
    %54 = vector.broadcast %52 : vector<6x1xf32> to vector<6x128xf32>
    %55 = vector.broadcast %53 : vector<1x128xf32> to vector<6x128xf32>
    %56 = arith.mulf %54, %55 : vector<6x128xf32>
    %57 = arith.addf %51, %56 : vector<6x128xf32>
    %58 = vector.extract_strided_slice %33 {offsets = [0, 4], sizes = [6, 1], strides = [1, 1]} : vector<6x10xf32> to vector<6x1xf32>
    %59 = vector.extract_strided_slice %32 {offsets = [4, 0], sizes = [1, 128], strides = [1, 1]} : vector<10x128xf32> to vector<1x128xf32>
    %60 = vector.broadcast %58 : vector<6x1xf32> to vector<6x128xf32>
    %61 = vector.broadcast %59 : vector<1x128xf32> to vector<6x128xf32>
    %62 = arith.mulf %60, %61 : vector<6x128xf32>
    %63 = arith.addf %57, %62 : vector<6x128xf32>
    %64 = vector.extract_strided_slice %33 {offsets = [0, 5], sizes = [6, 1], strides = [1, 1]} : vector<6x10xf32> to vector<6x1xf32>
    %65 = vector.extract_strided_slice %32 {offsets = [5, 0], sizes = [1, 128], strides = [1, 1]} : vector<10x128xf32> to vector<1x128xf32>
    %66 = vector.broadcast %64 : vector<6x1xf32> to vector<6x128xf32>
    %67 = vector.broadcast %65 : vector<1x128xf32> to vector<6x128xf32>
    %68 = arith.mulf %66, %67 : vector<6x128xf32>
    %69 = arith.addf %63, %68 : vector<6x128xf32>
    %70 = vector.extract_strided_slice %33 {offsets = [0, 6], sizes = [6, 1], strides = [1, 1]} : vector<6x10xf32> to vector<6x1xf32>
    %71 = vector.extract_strided_slice %32 {offsets = [6, 0], sizes = [1, 128], strides = [1, 1]} : vector<10x128xf32> to vector<1x128xf32>
    %72 = vector.broadcast %70 : vector<6x1xf32> to vector<6x128xf32>
    %73 = vector.broadcast %71 : vector<1x128xf32> to vector<6x128xf32>
    %74 = arith.mulf %72, %73 : vector<6x128xf32>
    %75 = arith.addf %69, %74 : vector<6x128xf32>
    %76 = vector.extract_strided_slice %33 {offsets = [0, 7], sizes = [6, 1], strides = [1, 1]} : vector<6x10xf32> to vector<6x1xf32>
    %77 = vector.extract_strided_slice %32 {offsets = [7, 0], sizes = [1, 128], strides = [1, 1]} : vector<10x128xf32> to vector<1x128xf32>
    %78 = vector.broadcast %76 : vector<6x1xf32> to vector<6x128xf32>
    %79 = vector.broadcast %77 : vector<1x128xf32> to vector<6x128xf32>
    %80 = arith.mulf %78, %79 : vector<6x128xf32>
    %81 = arith.addf %75, %80 : vector<6x128xf32>
    %82 = vector.extract_strided_slice %33 {offsets = [0, 8], sizes = [6, 1], strides = [1, 1]} : vector<6x10xf32> to vector<6x1xf32>
    %83 = vector.extract_strided_slice %32 {offsets = [8, 0], sizes = [1, 128], strides = [1, 1]} : vector<10x128xf32> to vector<1x128xf32>
    %84 = vector.broadcast %82 : vector<6x1xf32> to vector<6x128xf32>
    %85 = vector.broadcast %83 : vector<1x128xf32> to vector<6x128xf32>
    %86 = arith.mulf %84, %85 : vector<6x128xf32>
    %87 = arith.addf %81, %86 : vector<6x128xf32>
    %88 = vector.extract_strided_slice %33 {offsets = [0, 9], sizes = [6, 1], strides = [1, 1]} : vector<6x10xf32> to vector<6x1xf32>
    %89 = vector.extract_strided_slice %32 {offsets = [9, 0], sizes = [1, 128], strides = [1, 1]} : vector<10x128xf32> to vector<1x128xf32>
    %90 = vector.broadcast %88 : vector<6x1xf32> to vector<6x128xf32>
    %91 = vector.broadcast %89 : vector<1x128xf32> to vector<6x128xf32>
    %92 = arith.mulf %90, %91 : vector<6x128xf32>
    %93 = arith.addf %87, %92 : vector<6x128xf32>
    %94 = vector.broadcast %34 : vector<6x1xf32> to vector<6x128xf32>
    %95 = arith.addf %93, %94 : vector<6x128xf32>
    %cst_10 = arith.constant 0.000000e+00 : f32
    %96 = vector.broadcast %cst_10 : f32 to vector<6x128xf32>
    %97 = arith.cmpf ogt, %95, %96 : vector<6x128xf32>
    %cst_11 = arith.constant 0.00999999977 : f32
    %98 = vector.broadcast %cst_11 : f32 to vector<6x128xf32>
    %99 = arith.mulf %98, %95 : vector<6x128xf32>
    %100 = arith.select %97, %95, %99 : vector<6x128xi1>, vector<6x128xf32>
    %c0_12 = arith.constant 0 : index
    %c0_13 = arith.constant 0 : index
    %101 = vector.load %arg6[%c0_12, %c0_13] : memref<3x6xf32, #tpu.memory_space<vmem>>, vector<3x6xf32>
    %c0_14 = arith.constant 0 : index
    %c0_15 = arith.constant 0 : index
    %102 = vector.load %arg7[%c0_14, %c0_15] : memref<3x1xf32, #tpu.memory_space<vmem>>, vector<3x1xf32>
    %103 = vector.extract_strided_slice %101 {offsets = [0, 0], sizes = [3, 1], strides = [1, 1]} : vector<3x6xf32> to vector<3x1xf32>
    %104 = vector.extract_strided_slice %100 {offsets = [0, 0], sizes = [1, 128], strides = [1, 1]} : vector<6x128xf32> to vector<1x128xf32>
    %105 = vector.broadcast %103 : vector<3x1xf32> to vector<3x128xf32>
    %106 = vector.broadcast %104 : vector<1x128xf32> to vector<3x128xf32>
    %107 = arith.mulf %105, %106 : vector<3x128xf32>
    %108 = vector.extract_strided_slice %101 {offsets = [0, 1], sizes = [3, 1], strides = [1, 1]} : vector<3x6xf32> to vector<3x1xf32>
    %109 = vector.extract_strided_slice %100 {offsets = [1, 0], sizes = [1, 128], strides = [1, 1]} : vector<6x128xf32> to vector<1x128xf32>
    %110 = vector.broadcast %108 : vector<3x1xf32> to vector<3x128xf32>
    %111 = vector.broadcast %109 : vector<1x128xf32> to vector<3x128xf32>
    %112 = arith.mulf %110, %111 : vector<3x128xf32>
    %113 = arith.addf %107, %112 : vector<3x128xf32>
    %114 = vector.extract_strided_slice %101 {offsets = [0, 2], sizes = [3, 1], strides = [1, 1]} : vector<3x6xf32> to vector<3x1xf32>
    %115 = vector.extract_strided_slice %100 {offsets = [2, 0], sizes = [1, 128], strides = [1, 1]} : vector<6x128xf32> to vector<1x128xf32>
    %116 = vector.broadcast %114 : vector<3x1xf32> to vector<3x128xf32>
    %117 = vector.broadcast %115 : vector<1x128xf32> to vector<3x128xf32>
    %118 = arith.mulf %116, %117 : vector<3x128xf32>
    %119 = arith.addf %113, %118 : vector<3x128xf32>
    %120 = vector.extract_strided_slice %101 {offsets = [0, 3], sizes = [3, 1], strides = [1, 1]} : vector<3x6xf32> to vector<3x1xf32>
    %121 = vector.extract_strided_slice %100 {offsets = [3, 0], sizes = [1, 128], strides = [1, 1]} : vector<6x128xf32> to vector<1x128xf32>
    %122 = vector.broadcast %120 : vector<3x1xf32> to vector<3x128xf32>
    %123 = vector.broadcast %121 : vector<1x128xf32> to vector<3x128xf32>
    %124 = arith.mulf %122, %123 : vector<3x128xf32>
    %125 = arith.addf %119, %124 : vector<3x128xf32>
    %126 = vector.extract_strided_slice %101 {offsets = [0, 4], sizes = [3, 1], strides = [1, 1]} : vector<3x6xf32> to vector<3x1xf32>
    %127 = vector.extract_strided_slice %100 {offsets = [4, 0], sizes = [1, 128], strides = [1, 1]} : vector<6x128xf32> to vector<1x128xf32>
    %128 = vector.broadcast %126 : vector<3x1xf32> to vector<3x128xf32>
    %129 = vector.broadcast %127 : vector<1x128xf32> to vector<3x128xf32>
    %130 = arith.mulf %128, %129 : vector<3x128xf32>
    %131 = arith.addf %125, %130 : vector<3x128xf32>
    %132 = vector.extract_strided_slice %101 {offsets = [0, 5], sizes = [3, 1], strides = [1, 1]} : vector<3x6xf32> to vector<3x1xf32>
    %133 = vector.extract_strided_slice %100 {offsets = [5, 0], sizes = [1, 128], strides = [1, 1]} : vector<6x128xf32> to vector<1x128xf32>
    %134 = vector.broadcast %132 : vector<3x1xf32> to vector<3x128xf32>
    %135 = vector.broadcast %133 : vector<1x128xf32> to vector<3x128xf32>
    %136 = arith.mulf %134, %135 : vector<3x128xf32>
    %137 = arith.addf %131, %136 : vector<3x128xf32>
    %138 = vector.broadcast %102 : vector<3x1xf32> to vector<3x128xf32>
    %139 = arith.addf %137, %138 : vector<3x128xf32>
    %140 = math.tanh %139 : vector<3x128xf32>
    %c0_16 = arith.constant 0 : index
    %c0_17 = arith.constant 0 : index
    %141 = vector.load %arg8[%c0_16, %c0_17] : memref<6x3xf32, #tpu.memory_space<vmem>>, vector<6x3xf32>
    %c0_18 = arith.constant 0 : index
    %c0_19 = arith.constant 0 : index
    %142 = vector.load %arg9[%c0_18, %c0_19] : memref<6x1xf32, #tpu.memory_space<vmem>>, vector<6x1xf32>
    %143 = vector.extract_strided_slice %141 {offsets = [0, 0], sizes = [6, 1], strides = [1, 1]} : vector<6x3xf32> to vector<6x1xf32>
    %144 = vector.extract_strided_slice %140 {offsets = [0, 0], sizes = [1, 128], strides = [1, 1]} : vector<3x128xf32> to vector<1x128xf32>
    %145 = vector.broadcast %143 : vector<6x1xf32> to vector<6x128xf32>
    %146 = vector.broadcast %144 : vector<1x128xf32> to vector<6x128xf32>
    %147 = arith.mulf %145, %146 : vector<6x128xf32>
    %148 = vector.extract_strided_slice %141 {offsets = [0, 1], sizes = [6, 1], strides = [1, 1]} : vector<6x3xf32> to vector<6x1xf32>
    %149 = vector.extract_strided_slice %140 {offsets = [1, 0], sizes = [1, 128], strides = [1, 1]} : vector<3x128xf32> to vector<1x128xf32>
    %150 = vector.broadcast %148 : vector<6x1xf32> to vector<6x128xf32>
    %151 = vector.broadcast %149 : vector<1x128xf32> to vector<6x128xf32>
    %152 = arith.mulf %150, %151 : vector<6x128xf32>
    %153 = arith.addf %147, %152 : vector<6x128xf32>
    %154 = vector.extract_strided_slice %141 {offsets = [0, 2], sizes = [6, 1], strides = [1, 1]} : vector<6x3xf32> to vector<6x1xf32>
    %155 = vector.extract_strided_slice %140 {offsets = [2, 0], sizes = [1, 128], strides = [1, 1]} : vector<3x128xf32> to vector<1x128xf32>
    %156 = vector.broadcast %154 : vector<6x1xf32> to vector<6x128xf32>
    %157 = vector.broadcast %155 : vector<1x128xf32> to vector<6x128xf32>
    %158 = arith.mulf %156, %157 : vector<6x128xf32>
    %159 = arith.addf %153, %158 : vector<6x128xf32>
    %160 = vector.broadcast %142 : vector<6x1xf32> to vector<6x128xf32>
    %161 = arith.addf %159, %160 : vector<6x128xf32>
    %cst_20 = arith.constant 0.000000e+00 : f32
    %162 = vector.broadcast %cst_20 : f32 to vector<6x128xf32>
    %163 = arith.cmpf ogt, %161, %162 : vector<6x128xf32>
    %cst_21 = arith.constant 0.00999999977 : f32
    %164 = vector.broadcast %cst_21 : f32 to vector<6x128xf32>
    %165 = arith.mulf %164, %161 : vector<6x128xf32>
    %166 = arith.select %163, %161, %165 : vector<6x128xi1>, vector<6x128xf32>
    %c0_22 = arith.constant 0 : index
    %c0_23 = arith.constant 0 : index
    %167 = vector.load %arg10[%c0_22, %c0_23] : memref<10x6xf32, #tpu.memory_space<vmem>>, vector<10x6xf32>
    %c0_24 = arith.constant 0 : index
    %c0_25 = arith.constant 0 : index
    %168 = vector.load %arg11[%c0_24, %c0_25] : memref<10x1xf32, #tpu.memory_space<vmem>>, vector<10x1xf32>
    %169 = vector.extract_strided_slice %167 {offsets = [0, 0], sizes = [10, 1], strides = [1, 1]} : vector<10x6xf32> to vector<10x1xf32>
    %170 = vector.extract_strided_slice %166 {offsets = [0, 0], sizes = [1, 128], strides = [1, 1]} : vector<6x128xf32> to vector<1x128xf32>
    %171 = vector.broadcast %169 : vector<10x1xf32> to vector<10x128xf32>
    %172 = vector.broadcast %170 : vector<1x128xf32> to vector<10x128xf32>
    %173 = arith.mulf %171, %172 : vector<10x128xf32>
    %174 = vector.extract_strided_slice %167 {offsets = [0, 1], sizes = [10, 1], strides = [1, 1]} : vector<10x6xf32> to vector<10x1xf32>
    %175 = vector.extract_strided_slice %166 {offsets = [1, 0], sizes = [1, 128], strides = [1, 1]} : vector<6x128xf32> to vector<1x128xf32>
    %176 = vector.broadcast %174 : vector<10x1xf32> to vector<10x128xf32>
    %177 = vector.broadcast %175 : vector<1x128xf32> to vector<10x128xf32>
    %178 = arith.mulf %176, %177 : vector<10x128xf32>
    %179 = arith.addf %173, %178 : vector<10x128xf32>
    %180 = vector.extract_strided_slice %167 {offsets = [0, 2], sizes = [10, 1], strides = [1, 1]} : vector<10x6xf32> to vector<10x1xf32>
    %181 = vector.extract_strided_slice %166 {offsets = [2, 0], sizes = [1, 128], strides = [1, 1]} : vector<6x128xf32> to vector<1x128xf32>
    %182 = vector.broadcast %180 : vector<10x1xf32> to vector<10x128xf32>
    %183 = vector.broadcast %181 : vector<1x128xf32> to vector<10x128xf32>
    %184 = arith.mulf %182, %183 : vector<10x128xf32>
    %185 = arith.addf %179, %184 : vector<10x128xf32>
    %186 = vector.extract_strided_slice %167 {offsets = [0, 3], sizes = [10, 1], strides = [1, 1]} : vector<10x6xf32> to vector<10x1xf32>
    %187 = vector.extract_strided_slice %166 {offsets = [3, 0], sizes = [1, 128], strides = [1, 1]} : vector<6x128xf32> to vector<1x128xf32>
    %188 = vector.broadcast %186 : vector<10x1xf32> to vector<10x128xf32>
    %189 = vector.broadcast %187 : vector<1x128xf32> to vector<10x128xf32>
    %190 = arith.mulf %188, %189 : vector<10x128xf32>
    %191 = arith.addf %185, %190 : vector<10x128xf32>
    %192 = vector.extract_strided_slice %167 {offsets = [0, 4], sizes = [10, 1], strides = [1, 1]} : vector<10x6xf32> to vector<10x1xf32>
    %193 = vector.extract_strided_slice %166 {offsets = [4, 0], sizes = [1, 128], strides = [1, 1]} : vector<6x128xf32> to vector<1x128xf32>
    %194 = vector.broadcast %192 : vector<10x1xf32> to vector<10x128xf32>
    %195 = vector.broadcast %193 : vector<1x128xf32> to vector<10x128xf32>
    %196 = arith.mulf %194, %195 : vector<10x128xf32>
    %197 = arith.addf %191, %196 : vector<10x128xf32>
    %198 = vector.extract_strided_slice %167 {offsets = [0, 5], sizes = [10, 1], strides = [1, 1]} : vector<10x6xf32> to vector<10x1xf32>
    %199 = vector.extract_strided_slice %166 {offsets = [5, 0], sizes = [1, 128], strides = [1, 1]} : vector<6x128xf32> to vector<1x128xf32>
    %200 = vector.broadcast %198 : vector<10x1xf32> to vector<10x128xf32>
    %201 = vector.broadcast %199 : vector<1x128xf32> to vector<10x128xf32>
    %202 = arith.mulf %200, %201 : vector<10x128xf32>
    %203 = arith.addf %197, %202 : vector<10x128xf32>
    %204 = vector.broadcast %168 : vector<10x1xf32> to vector<10x128xf32>
    %205 = arith.addf %203, %204 : vector<10x128xf32>
    %cst_26 = arith.constant 0.000000e+00 : f32
    %206 = vector.broadcast %cst_26 : f32 to vector<10x128xf32>
    %207 = arith.cmpf ogt, %205, %206 : vector<10x128xf32>
    %cst_27 = arith.constant 0.00999999977 : f32
    %208 = vector.broadcast %cst_27 : f32 to vector<10x128xf32>
    %209 = arith.mulf %208, %205 : vector<10x128xf32>
    %210 = arith.select %207, %205, %209 : vector<10x128xi1>, vector<10x128xf32>
    %c0_28 = arith.constant 0 : index
    %c0_29 = arith.constant 0 : index
    %211 = vector.load %arg12[%c0_28, %c0_29] : memref<4x10xf32, #tpu.memory_space<vmem>>, vector<4x10xf32>
    %c0_30 = arith.constant 0 : index
    %c0_31 = arith.constant 0 : index
    %212 = vector.load %arg13[%c0_30, %c0_31] : memref<4x1xf32, #tpu.memory_space<vmem>>, vector<4x1xf32>
    %213 = vector.extract_strided_slice %211 {offsets = [0, 0], sizes = [4, 1], strides = [1, 1]} : vector<4x10xf32> to vector<4x1xf32>
    %214 = vector.extract_strided_slice %210 {offsets = [0, 0], sizes = [1, 128], strides = [1, 1]} : vector<10x128xf32> to vector<1x128xf32>
    %215 = vector.broadcast %213 : vector<4x1xf32> to vector<4x128xf32>
    %216 = vector.broadcast %214 : vector<1x128xf32> to vector<4x128xf32>
    %217 = arith.mulf %215, %216 : vector<4x128xf32>
    %218 = vector.extract_strided_slice %211 {offsets = [0, 1], sizes = [4, 1], strides = [1, 1]} : vector<4x10xf32> to vector<4x1xf32>
    %219 = vector.extract_strided_slice %210 {offsets = [1, 0], sizes = [1, 128], strides = [1, 1]} : vector<10x128xf32> to vector<1x128xf32>
    %220 = vector.broadcast %218 : vector<4x1xf32> to vector<4x128xf32>
    %221 = vector.broadcast %219 : vector<1x128xf32> to vector<4x128xf32>
    %222 = arith.mulf %220, %221 : vector<4x128xf32>
    %223 = arith.addf %217, %222 : vector<4x128xf32>
    %224 = vector.extract_strided_slice %211 {offsets = [0, 2], sizes = [4, 1], strides = [1, 1]} : vector<4x10xf32> to vector<4x1xf32>
    %225 = vector.extract_strided_slice %210 {offsets = [2, 0], sizes = [1, 128], strides = [1, 1]} : vector<10x128xf32> to vector<1x128xf32>
    %226 = vector.broadcast %224 : vector<4x1xf32> to vector<4x128xf32>
    %227 = vector.broadcast %225 : vector<1x128xf32> to vector<4x128xf32>
    %228 = arith.mulf %226, %227 : vector<4x128xf32>
    %229 = arith.addf %223, %228 : vector<4x128xf32>
    %230 = vector.extract_strided_slice %211 {offsets = [0, 3], sizes = [4, 1], strides = [1, 1]} : vector<4x10xf32> to vector<4x1xf32>
    %231 = vector.extract_strided_slice %210 {offsets = [3, 0], sizes = [1, 128], strides = [1, 1]} : vector<10x128xf32> to vector<1x128xf32>
    %232 = vector.broadcast %230 : vector<4x1xf32> to vector<4x128xf32>
    %233 = vector.broadcast %231 : vector<1x128xf32> to vector<4x128xf32>
    %234 = arith.mulf %232, %233 : vector<4x128xf32>
    %235 = arith.addf %229, %234 : vector<4x128xf32>
    %236 = vector.extract_strided_slice %211 {offsets = [0, 4], sizes = [4, 1], strides = [1, 1]} : vector<4x10xf32> to vector<4x1xf32>
    %237 = vector.extract_strided_slice %210 {offsets = [4, 0], sizes = [1, 128], strides = [1, 1]} : vector<10x128xf32> to vector<1x128xf32>
    %238 = vector.broadcast %236 : vector<4x1xf32> to vector<4x128xf32>
    %239 = vector.broadcast %237 : vector<1x128xf32> to vector<4x128xf32>
    %240 = arith.mulf %238, %239 : vector<4x128xf32>
    %241 = arith.addf %235, %240 : vector<4x128xf32>
    %242 = vector.extract_strided_slice %211 {offsets = [0, 5], sizes = [4, 1], strides = [1, 1]} : vector<4x10xf32> to vector<4x1xf32>
    %243 = vector.extract_strided_slice %210 {offsets = [5, 0], sizes = [1, 128], strides = [1, 1]} : vector<10x128xf32> to vector<1x128xf32>
    %244 = vector.broadcast %242 : vector<4x1xf32> to vector<4x128xf32>
    %245 = vector.broadcast %243 : vector<1x128xf32> to vector<4x128xf32>
    %246 = arith.mulf %244, %245 : vector<4x128xf32>
    %247 = arith.addf %241, %246 : vector<4x128xf32>
    %248 = vector.extract_strided_slice %211 {offsets = [0, 6], sizes = [4, 1], strides = [1, 1]} : vector<4x10xf32> to vector<4x1xf32>
    %249 = vector.extract_strided_slice %210 {offsets = [6, 0], sizes = [1, 128], strides = [1, 1]} : vector<10x128xf32> to vector<1x128xf32>
    %250 = vector.broadcast %248 : vector<4x1xf32> to vector<4x128xf32>
    %251 = vector.broadcast %249 : vector<1x128xf32> to vector<4x128xf32>
    %252 = arith.mulf %250, %251 : vector<4x128xf32>
    %253 = arith.addf %247, %252 : vector<4x128xf32>
    %254 = vector.extract_strided_slice %211 {offsets = [0, 7], sizes = [4, 1], strides = [1, 1]} : vector<4x10xf32> to vector<4x1xf32>
    %255 = vector.extract_strided_slice %210 {offsets = [7, 0], sizes = [1, 128], strides = [1, 1]} : vector<10x128xf32> to vector<1x128xf32>
    %256 = vector.broadcast %254 : vector<4x1xf32> to vector<4x128xf32>
    %257 = vector.broadcast %255 : vector<1x128xf32> to vector<4x128xf32>
    %258 = arith.mulf %256, %257 : vector<4x128xf32>
    %259 = arith.addf %253, %258 : vector<4x128xf32>
    %260 = vector.extract_strided_slice %211 {offsets = [0, 8], sizes = [4, 1], strides = [1, 1]} : vector<4x10xf32> to vector<4x1xf32>
    %261 = vector.extract_strided_slice %210 {offsets = [8, 0], sizes = [1, 128], strides = [1, 1]} : vector<10x128xf32> to vector<1x128xf32>
    %262 = vector.broadcast %260 : vector<4x1xf32> to vector<4x128xf32>
    %263 = vector.broadcast %261 : vector<1x128xf32> to vector<4x128xf32>
    %264 = arith.mulf %262, %263 : vector<4x128xf32>
    %265 = arith.addf %259, %264 : vector<4x128xf32>
    %266 = vector.extract_strided_slice %211 {offsets = [0, 9], sizes = [4, 1], strides = [1, 1]} : vector<4x10xf32> to vector<4x1xf32>
    %267 = vector.extract_strided_slice %210 {offsets = [9, 0], sizes = [1, 128], strides = [1, 1]} : vector<10x128xf32> to vector<1x128xf32>
    %268 = vector.broadcast %266 : vector<4x1xf32> to vector<4x128xf32>
    %269 = vector.broadcast %267 : vector<1x128xf32> to vector<4x128xf32>
    %270 = arith.mulf %268, %269 : vector<4x128xf32>
    %271 = arith.addf %265, %270 : vector<4x128xf32>
    %272 = vector.broadcast %212 : vector<4x1xf32> to vector<4x128xf32>
    %273 = arith.addf %271, %272 : vector<4x128xf32>
    %274 = math.tanh %273 : vector<4x128xf32>
    %c0_32 = arith.constant 0 : index
    %c0_33 = arith.constant 0 : index
    %275 = vector.load %arg14[%c0_32, %c0_33] : memref<4x128xf32, #tpu.memory_space<vmem>>, vector<4x128xf32>
    tpu.vector_store %arg14[%c0_32, %c0_33], %274 {strides = array<i32>} : memref<4x128xf32, #tpu.memory_space<vmem>>, vector<4x128xf32>,
    return
  }
  func.func @transform_0(%arg0: i32) -> (i32, i32) {
    %c0_i32 = arith.constant 0 : i32
    %c0_i32_0 = arith.constant 0 : i32
    return %c0_i32, %arg0 : i32, i32
  }
  func.func @transform_1(%arg0: i32) -> (i32, i32) {
    %c0_i32 = arith.constant 0 : i32
    %c0_i32_0 = arith.constant 0 : i32
    %c0_i32_1 = arith.constant 0 : i32
    return %c0_i32, %c0_i32_0 : i32, i32
  }
  func.func @transform_2(%arg0: i32) -> (i32, i32) {
    %c0_i32 = arith.constant 0 : i32
    %c0_i32_0 = arith.constant 0 : i32
    %c0_i32_1 = arith.constant 0 : i32
    return %c0_i32, %c0_i32_0 : i32, i32
  }
  func.func @transform_3(%arg0: i32) -> (i32, i32) {
    %c0_i32 = arith.constant 0 : i32
    %c0_i32_0 = arith.constant 0 : i32
    %c0_i32_1 = arith.constant 0 : i32
    return %c0_i32, %c0_i32_0 : i32, i32
  }
  func.func @transform_4(%arg0: i32) -> (i32, i32) {
    %c0_i32 = arith.constant 0 : i32
    %c0_i32_0 = arith.constant 0 : i32
    %c0_i32_1 = arith.constant 0 : i32
    return %c0_i32, %c0_i32_0 : i32, i32
  }
  func.func @transform_5(%arg0: i32) -> (i32, i32) {
    %c0_i32 = arith.constant 0 : i32
    %c0_i32_0 = arith.constant 0 : i32
    %c0_i32_1 = arith.constant 0 : i32
    return %c0_i32, %c0_i32_0 : i32, i32
  }
  func.func @transform_6(%arg0: i32) -> (i32, i32) {
    %c0_i32 = arith.constant 0 : i32
    %c0_i32_0 = arith.constant 0 : i32
    %c0_i32_1 = arith.constant 0 : i32
    return %c0_i32, %c0_i32_0 : i32, i32
  }
  func.func @transform_7(%arg0: i32) -> (i32, i32) {
    %c0_i32 = arith.constant 0 : i32
    %c0_i32_0 = arith.constant 0 : i32
    %c0_i32_1 = arith.constant 0 : i32
    return %c0_i32, %c0_i32_0 : i32, i32
  }
  func.func @transform_8(%arg0: i32) -> (i32, i32) {
    %c0_i32 = arith.constant 0 : i32
    %c0_i32_0 = arith.constant 0 : i32
    %c0_i32_1 = arith.constant 0 : i32
    return %c0_i32, %c0_i32_0 : i32, i32
  }
  func.func @transform_9(%arg0: i32) -> (i32, i32) {
    %c0_i32 = arith.constant 0 : i32
    %c0_i32_0 = arith.constant 0 : i32
    %c0_i32_1 = arith.constant 0 : i32
    return %c0_i32, %c0_i32_0 : i32, i32
  }
  func.func @transform_10(%arg0: i32) -> (i32, i32) {
    %c0_i32 = arith.constant 0 : i32
    %c0_i32_0 = arith.constant 0 : i32
    %c0_i32_1 = arith.constant 0 : i32
    return %c0_i32, %c0_i32_0 : i32, i32
  }
  func.func @transform_11(%arg0: i32) -> (i32, i32) {
    %c0_i32 = arith.constant 0 : i32
    %c0_i32_0 = arith.constant 0 : i32
    %c0_i32_1 = arith.constant 0 : i32
    return %c0_i32, %c0_i32_0 : i32, i32
  }
  func.func @transform_12(%arg0: i32) -> (i32, i32) {
    %c0_i32 = arith.constant 0 : i32
    %c0_i32_0 = arith.constant 0 : i32
    %c0_i32_1 = arith.constant 0 : i32
    return %c0_i32, %c0_i32_0 : i32, i32
  }
  func.func @transform_13(%arg0: i32) -> (i32, i32) {
    %c0_i32 = arith.constant 0 : i32
    %c0_i32_0 = arith.constant 0 : i32
    return %c0_i32, %arg0 : i32, i32
  }
}

</mosaic_0001>

<bundles_post_ra>
// kernel: tpu_custom_call.1
= control target key start
LH: loop header
LB: loop body
LE: loop exit
PB: predicated region body
PF: predicated region fallthrough
CT: control target
= control target key end

     0   :  { %v573_v1 = vmov 2   ;;  %v574_v2 = vmov 1   ;;  %v575_v3 = vmov 0   ;;  %s783_s0 = inlined_call_operand.vmem [shape: f32[4,128], index: 0, kind: input, shape index: {}]   ;;  %s784_s1 = inlined_call_operand.vmem [shape: f32[10,4], index: 1, kind: input, shape index: {}]   ;;  %s785_s2 = inlined_call_operand.vmem [shape: f32[10,1], index: 2, kind: input, shape index: {}]   ;;  %s786_s3 = inlined_call_operand.vmem [shape: f32[6,10], index: 3, kind: input, shape index: {}]   ;;  %s787_s4 = inlined_call_operand.vmem [shape: f32[6,1], index: 4, kind: input, shape index: {}]   ;;  %s788_s5 = inlined_call_operand.vmem [shape: f32[3,6], index: 5, kind: input, shape index: {}]   ;;  %s789_s6 = inlined_call_operand.vmem [shape: f32[3,1], index: 6, kind: input, shape index: {}]   ;;  %s790_s7 = inlined_call_operand.vmem [shape: f32[6,3], index: 7, kind: input, shape index: {}]   ;;  %s791_s8 = inlined_call_operand.vmem [shape: f32[6,1], index: 8, kind: input, shape index: {}]   ;;  %s792_s9 = inlined_call_operand.vmem [shape: f32[10,6], index: 9, kind: input, shape index: {}]   ;;  %s793_s10 = inlined_call_operand.vmem [shape: f32[10,1], index: 10, kind: input, shape index: {}]   ;;  %s794_s11 = inlined_call_operand.vmem [shape: f32[4,10], index: 11, kind: input, shape index: {}]   ;;  %s795_s12 = inlined_call_operand.vmem [shape: f32[4,1], index: 12, kind: input, shape index: {}]   ;;  %s796_s13 = inlined_call_operand.hbm [shape: f32[4,128], index: 13, kind: output, shape index: {}]  }
   0x1   :  { %v46_v0 = vld [vmem:[%s784_s1] sm:$0xff]  ;;  %493 = vset.pattern.permute.xlu2 %v573_v1  ;;  %492 = vset.pattern.permute.xlu1 %v574_v2 }
   0x2   :  { %491 = vset.pattern.permute.xlu0 %v575_v3  ;;  %77 = vperm.xlu2 %493, %v46_v0  }
   0x3   :  { %18 = vsyncpa [#allocation3], 0  ;;  %64 = vperm.xlu1 %492, %v46_v0   ;;  %52 = vperm.xlu0 %491, %v46_v0   ;;  %v47_v4 = vld [vmem:[%s784_s1 + $0x8] sm:$0x3]  ;;  %v48_v5 = vld [vmem:[%s785_s2] sm:$0xff]  ;;  %v576_v6 = vmov 3  }
   0x4   :  { %v120_v7 = vld [vmem:[%s786_s3] sm:$0x3f]  ;;  %v49_v8 = vld [vmem:[%s785_s2 + $0x8] sm:$0x3]  ;;  %v577_v9 = vmov 6   ;;  %v578_v10 = vmov 5  }
   0x5   :  { %v201_v11 = vld [vmem:[%s788_s5] sm:$0x7]  ;;  %v579_v12 = vmov 4   ;;  %v580_v13 = vmov 8   ;;  %v581_v14 = vmov 7   ;;  %v582_v17 = vmov 9  }
   0x6   :  { %v121_v15 = vld [vmem:[%s787_s4] sm:$0x3f]  ;;  %v285_v19 = vld [vmem:[%s792_s9 + $0x8] sm:$0x3]  ;;  %s471_s1 = sshll.u32 %s796_s13, 4  ;;  %s472_s1 = int_to_ptr.hbm [resolvable:$true] %s471_s1 }
   0x7   :  { %v253_v16 = vld [vmem:[%s791_s8] sm:$0x3f]  ;;  %v287_v56 = vld [vmem:[%s793_s10 + $0x8] sm:$0x3] }
   0x8   :  { %v701_v18 = vld [vmem:[%s792_s9] sm:$0xff] }
   0x9   :  { %v252_v20 = vld [vmem:[%s790_s7] sm:$0x3f] }
   0xa   :  { %81 = vperm.xlu2 %493, %v47_v4   ;;  %v202_v21 = vld [vmem:[%s789_s6] sm:$0x7] }
   0xb   :  { %68 = vperm.xlu1 %492, %v47_v4   ;;  %57 = vperm.xlu0 %491, %v47_v4   ;;  %v45_v27 = vld [vmem:[%s783_s0] sm:$0xf] }
   0xc   :  { %v737_v28 = vld [vmem:[%s794_s11] sm:$0xf]  ;;  %v71_v29 = vperm.slane %v45_v27, 1  ;;  %v60_v30 = vperm.slane %v45_v27, 0  ;;  %v84_v33 = vperm.slane %v45_v27, 2  ;;  %v97_v39 = vperm.slane %v45_v27, 3 }
   0xd   :  { %v286_v58 = vld [vmem:[%s793_s10] sm:$0xff] }
   0xe   :  { %v385_v27 = vld [vmem:[%s795_s12] sm:$0xf]  ;;  %s583_s12 = smov [#allocation2]  }
   0xf   :  { %s469_s30 = sshll.u32 %s583_s12, 4  ;;  %s470_s30 = int_to_ptr.vmem [resolvable:$true] %s469_s30 }
  0x12   :  { %496 = vset.pattern.permute.xlu2 %v575_v3 }
  0x13   :  { %495 = vset.pattern.permute.xlu1 %v576_v6  ;;  %494 = vset.pattern.permute.xlu0 %v576_v6 }
  0x14   :  { %104 = vperm.xlu2 %496, %v48_v5   ;;  %94 = vperm.xlu1 %495, %v47_v4  }
  0x15   :  { %90 = vperm.xlu0 %494, %v46_v0  }
  0x1c   :  { %124 = vperm.xlu2 %496, %v120_v7   ;;  %497 = vset.pattern.permute.xlu1 %v575_v3 }
  0x1d   :  { %498 = vset.pattern.permute.xlu0 %v574_v2  ;;  %109 = vperm.xlu1 %497, %v49_v8  }
  0x1e   :  { %130 = vperm.xlu0 %498, %v120_v7  }
  0x24   :  { %500 = vset.pattern.permute.xlu2 %v576_v6 }
  0x25   :  { %144 = vperm.xlu2 %500, %v120_v7   ;;  %499 = vset.pattern.permute.xlu1 %v573_v1 }
  0x26   :  { %503 = vset.pattern.permute.xlu0 %v577_v9  ;;  %137 = vperm.xlu1 %499, %v120_v7  }
  0x27   :  { %165 = vperm.xlu0 %503, %v120_v7  }
  0x2d   :  { %502 = vset.pattern.permute.xlu2 %v578_v10 }
  0x2e   :  { %158 = vperm.xlu2 %502, %v120_v7   ;;  %501 = vset.pattern.permute.xlu1 %v579_v12 }
  0x2f   :  { %151 = vperm.xlu1 %501, %v120_v7   ;;  %512 = vset.pattern.permute.xlu0 %v578_v10 }
  0x30   :  { %239 = vperm.xlu0 %512, %v201_v11  }
  0x36   :  { %505 = vset.pattern.permute.xlu2 %v580_v13 }
  0x37   :  { %179 = vperm.xlu2 %505, %v120_v7   ;;  %504 = vset.pattern.permute.xlu1 %v581_v14 }
  0x38   :  { %172 = vperm.xlu1 %504, %v120_v7   ;;  %513 = vset.pattern.permute.xlu0 %v575_v3 }
  0x39   :  { %205 = vperm.xlu0 %513, %v201_v11  }
  0x3f   :  { %507 = vset.pattern.permute.xlu2 %v575_v3 }
  0x40   :  { %194 = vperm.xlu2 %507, %v121_v15   ;;  %506 = vset.pattern.permute.xlu1 %v582_v17 }
  0x41   :  { %186 = vperm.xlu1 %506, %v120_v7   ;;  %277 = vperm.xlu0 %513, %v253_v16  }
  0x48   :  { %509 = vset.pattern.permute.xlu2 %v573_v1 }
  0x49   :  { %218 = vperm.xlu2 %509, %v201_v11   ;;  %508 = vset.pattern.permute.xlu1 %v574_v2 }
  0x4a   :  { %211 = vperm.xlu1 %508, %v201_v11   ;;  %522 = vset.pattern.permute.xlu0 %v573_v1 }
  0x4b   :  { %315 = vperm.xlu0 %522, %v701_v18  }
  0x51   :  { %511 = vset.pattern.permute.xlu2 %v579_v12 }
  0x52   :  { %232 = vperm.xlu2 %511, %v201_v11   ;;  %510 = vset.pattern.permute.xlu1 %v576_v6 }
  0x53   :  { %225 = vperm.xlu1 %510, %v201_v11   ;;  %527 = vset.pattern.permute.xlu0 %v579_v12 }
  0x54   :  { %345 = vperm.xlu0 %527, %v285_v19  }
  0x5a   :  { %515 = vset.pattern.permute.xlu2 %v575_v3 }
  0x5b   :  { %256 = vperm.xlu2 %515, %v252_v20   ;;  %514 = vset.pattern.permute.xlu1 %v575_v3 }
  0x5c   :  { %247 = vperm.xlu1 %514, %v202_v21   ;;  %532 = vset.pattern.permute.xlu0 %v575_v3  ;;  %v78_v22 = vpop.permute.xlu2 %77 }
  0x5d   :  { %388 = vperm.xlu0 %532, %v737_v28   ;;  %v85_v37 = vmul.f32 %v84_v33, %v78_v22 }
  0x63   :  { %517 = vset.pattern.permute.xlu2 %v573_v1 }
  0x64   :  { %269 = vperm.xlu2 %517, %v252_v20   ;;  %516 = vset.pattern.permute.xlu1 %v574_v2  ;;  %v725_v23 = vpop.permute.xlu2 %81 }
  0x65   :  { %262 = vperm.xlu1 %516, %v252_v20   ;;  %537 = vset.pattern.permute.xlu0 %v578_v10  ;;  %v86_v0 = vmul.f32 %v84_v33, %v725_v23 }
  0x66   :  { %422 = vperm.xlu0 %537, %v737_v28  }
  0x6c   :  { %519 = vset.pattern.permute.xlu2 %v575_v3 }
  0x6d   :  { %295 = vperm.xlu2 %519, %v285_v19   ;;  %518 = vset.pattern.permute.xlu1 %v575_v3 }
  0x6e   :  { %290 = vperm.xlu1 %518, %v701_v18   ;;  %v105_v26 = vpop.permute.xlu2 %104  ;;  %542 = vset.pattern.permute.xlu0 %v575_v3 }
  0x6f   :  { %458 = vperm.xlu0 %542, %v385_v27  }
  0x75   :  { %521 = vset.pattern.permute.xlu2 %v574_v2  ;;  %v65_v24 = vpop.permute.xlu1 %64  ;;  %v53_v25 = vpop.permute.xlu0 %52 }
  0x76   :  { %306 = vperm.xlu2 %521, %v285_v19   ;;  %520 = vset.pattern.permute.xlu1 %v574_v2  ;;  %v72_v34 = vmul.f32 %v71_v29, %v65_v24  ;;  %v61_v35 = vmul.f32 %v60_v30, %v53_v25  ;;  %v125_v36 = vpop.permute.xlu2 %124 }
  0x77   :  { %302 = vperm.xlu1 %520, %v701_v18  }
  0x78   :  { %v74_v38 = vadd.f32 %v72_v34, %v61_v35 }
  0x7a   :  { %v87_v42 = vadd.f32 %v85_v37, %v74_v38 }
  0x7d   :  { %v69_v31 = vpop.permute.xlu1 %68  ;;  %v58_v32 = vpop.permute.xlu0 %57 }
  0x7e   :  { %524 = vset.pattern.permute.xlu2 %v576_v6  ;;  %v73_v53 = vmul.f32 %v71_v29, %v69_v31  ;;  %v62_v54 = vmul.f32 %v60_v30, %v58_v32 }
  0x7f   :  { %328 = vperm.xlu2 %524, %v701_v18   ;;  %523 = vset.pattern.permute.xlu1 %v573_v1  ;;  %v145_v45 = vpop.permute.xlu2 %144 }
  0x80   :  { %319 = vperm.xlu1 %523, %v285_v19   ;;  %v75_v62 = vadd.f32 %v73_v53, %v62_v54 }
  0x82   :  { %v88_v8 = vadd.f32 %v86_v0, %v75_v62 }
  0x86   :  { %v95_v40 = vpop.permute.xlu1 %94 }
  0x87   :  { %v91_v41 = vpop.permute.xlu0 %90  ;;  %526 = vset.pattern.permute.xlu2 %v579_v12  ;;  %v99_v4 = vmul.f32 %v97_v39, %v95_v40 }
  0x88   :  { %v98_v43 = vmul.f32 %v97_v39, %v91_v41  ;;  %341 = vperm.xlu2 %526, %v701_v18   ;;  %525 = vset.pattern.permute.xlu1 %v576_v6  ;;  %v159_v50 = vpop.permute.xlu2 %158 }
  0x89   :  { %332 = vperm.xlu1 %525, %v285_v19   ;;  %v101_v16 = vadd.f32 %v99_v4, %v88_v8 }
  0x8a   :  { %v100_v44 = vadd.f32 %v98_v43, %v87_v42 }
  0x8c   :  { %v112_v46 = vadd.f32 %v105_v26, %v100_v44 }
  0x8e   :  { %v116_v47 = vmul.f32 0.01, %v112_v46  ;;  %vm114_vm0 = vcmp.gt.f32.partialorder %v112_v46, 0.0 }
  0x8f   :  { %v110_v48 = vpop.permute.xlu1 %109 }
  0x90   :  { %529 = vset.pattern.permute.xlu2 %v578_v10  ;;  %v118_v49 = vsel %vm114_vm0, %v112_v46, %v116_v47  ;;  %v131_v55 = vpop.permute.xlu0 %130  ;;  %v113_v21 = vadd.f32 %v110_v48, %v101_v16 }
  0x91   :  { %358 = vperm.xlu2 %529, %v285_v19   ;;  %528 = vset.pattern.permute.xlu1 %v578_v10  ;;  %v127_v51 = vperm.slane %v118_v49, 0  ;;  %v133_v52 = vperm.slane %v118_v49, 1  ;;  %v140_v61 = vperm.slane %v118_v49, 2  ;;  %v147_v7 = vperm.slane %v118_v49, 3  ;;  %v180_v10 = vpop.permute.xlu2 %179 }
  0x92   :  { %354 = vperm.xlu1 %528, %v701_v18   ;;  %v154_v15 = vperm.slane %v118_v49, 4  ;;  %v117_v24 = vmul.f32 0.01, %v113_v21  ;;  %vm115_vm1 = vcmp.gt.f32.partialorder %v113_v21, 0.0  ;;  %v175_v32 = vperm.slane %v118_v49, 7 }
  0x93   :  { %v128_v59 = vmul.f32 %v127_v51, %v125_v36  ;;  %v134_v60 = vmul.f32 %v133_v52, %v131_v55  ;;  %v148_v19 = vmul.f32 %v147_v7, %v145_v45 }
  0x95   :  { %v135_v5 = vadd.f32 %v134_v60, %v128_v59 }
  0x98   :  { %v138_v57 = vpop.permute.xlu1 %137 }
  0x99   :  { %531 = vset.pattern.permute.xlu2 %v575_v3  ;;  %v141_v63 = vmul.f32 %v140_v61, %v138_v57  ;;  %v166_v29 = vpop.permute.xlu0 %165 }
  0x9a   :  { %373 = vperm.xlu2 %531, %v287_v56   ;;  %530 = vset.pattern.permute.xlu1 %v575_v3  ;;  %v161_v3 = vperm.slane %v118_v49, 5  ;;  %v195_v25 = vpop.permute.xlu2 %194 }
  0x9b   :  { %368 = vperm.xlu1 %530, %v286_v58   ;;  %v142_v11 = vadd.f32 %v141_v63, %v135_v5 }
  0x9c   :  { %v162_v26 = vmul.f32 %v161_v3, %v159_v50 }
  0x9d   :  { %v149_v22 = vadd.f32 %v148_v19, %v142_v11 }
  0xa1   :  { %v152_v18 = vpop.permute.xlu1 %151 }
  0xa2   :  { %v155_v20 = vmul.f32 %v154_v15, %v152_v18  ;;  %534 = vset.pattern.permute.xlu2 %v573_v1  ;;  %v168_v1 = vperm.slane %v118_v49, 6  ;;  %v240_v41 = vpop.permute.xlu0 %239 }
  0xa3   :  { %401 = vperm.xlu2 %534, %v737_v28   ;;  %533 = vset.pattern.permute.xlu1 %v574_v2  ;;  %v119_v2 = vsel %vm115_vm1, %v113_v21, %v117_v24  ;;  %v219_v38 = vpop.permute.xlu2 %218 }
  0xa4   :  { %394 = vperm.xlu1 %533, %v737_v28   ;;  %v156_v23 = vadd.f32 %v155_v20, %v149_v22  ;;  %v169_v33 = vmul.f32 %v168_v1, %v166_v29  ;;  %v182_v35 = vperm.slane %v119_v2, 0  ;;  %v189_v40 = vperm.slane %v119_v2, 1 }
  0xa6   :  { %v163_v30 = vadd.f32 %v162_v26, %v156_v23  ;;  %v183_v39 = vmul.f32 %v182_v35, %v180_v10 }
  0xa8   :  { %v170_v36 = vadd.f32 %v169_v33, %v163_v30 }
  0xaa   :  { %v173_v31 = vpop.permute.xlu1 %172 }
  0xab   :  { %536 = vset.pattern.permute.xlu2 %v579_v12  ;;  %v176_v34 = vmul.f32 %v175_v32, %v173_v31  ;;  %v206_v49 = vpop.permute.xlu0 %205 }
  0xac   :  { %415 = vperm.xlu2 %536, %v737_v28   ;;  %535 = vset.pattern.permute.xlu1 %v576_v6  ;;  %v233_v46 = vpop.permute.xlu2 %232 }
  0xad   :  { %408 = vperm.xlu1 %535, %v737_v28   ;;  %v177_v37 = vadd.f32 %v176_v34, %v170_v36 }
  0xaf   :  { %v184_v43 = vadd.f32 %v183_v39, %v177_v37 }
  0xb3   :  { %v187_v42 = vpop.permute.xlu1 %186 }
  0xb4   :  { %v190_v44 = vmul.f32 %v189_v40, %v187_v42  ;;  %539 = vset.pattern.permute.xlu2 %v581_v14 }
  0xb5   :  { %436 = vperm.xlu2 %539, %v737_v28   ;;  %538 = vset.pattern.permute.xlu1 %v577_v9  ;;  %v257_v57 = vpop.permute.xlu2 %256 }
  0xb6   :  { %v191_v12 = vadd.f32 %v190_v44, %v184_v43  ;;  %429 = vperm.xlu1 %538, %v737_v28  }
  0xb8   :  { %v197_v6 = vadd.f32 %v195_v25, %v191_v12  ;;  %v278_v25 = vpop.permute.xlu0 %277 }
  0xba   :  { %vm198_vm2 = vcmp.gt.f32.partialorder %v197_v6, 0.0  ;;  %v199_v45 = vmul.f32 0.01, %v197_v6 }
  0xbc   :  { %v200_v47 = vsel %vm198_vm2, %v197_v6, %v199_v45  ;;  %v212_v48 = vpop.permute.xlu1 %211 }
  0xbd   :  { %v214_v50 = vperm.slane %v200_v47, 1  ;;  %541 = vset.pattern.permute.xlu2 %v582_v17  ;;  %v208_v51 = vperm.slane %v200_v47, 0  ;;  %v221_v52 = vperm.slane %v200_v47, 2  ;;  %v228_v55 = vperm.slane %v200_v47, 3 }
  0xbe   :  { %450 = vperm.xlu2 %541, %v737_v28   ;;  %540 = vset.pattern.permute.xlu1 %v580_v13  ;;  %v235_v56 = vperm.slane %v200_v47, 4  ;;  %v242_v59 = vperm.slane %v200_v47, 5  ;;  %v270_v5 = vpop.permute.xlu2 %269 }
  0xbf   :  { %v215_v14 = vmul.f32 %v214_v50, %v212_v48  ;;  %v209_v9 = vmul.f32 %v208_v51, %v206_v49  ;;  %443 = vperm.xlu1 %540, %v737_v28   ;;  %v222_v54 = vmul.f32 %v221_v52, %v219_v38 }
  0xc0   :  { %v236_v62 = vmul.f32 %v235_v56, %v233_v46  ;;  %v243_v63 = vmul.f32 %v242_v59, %v240_v41  ;;  %v316_v38 = vpop.permute.xlu0 %315 }
  0xc1   :  { %v216_v53 = vadd.f32 %v215_v14, %v209_v9 }
  0xc3   :  { %v223_v60 = vadd.f32 %v222_v54, %v216_v53 }
  0xc5   :  { %v226_v58 = vpop.permute.xlu1 %225 }
  0xc6   :  { %v229_v61 = vmul.f32 %v228_v55, %v226_v58 }
  0xc7   :  { %v296_v8 = vpop.permute.xlu2 %295 }
  0xc8   :  { %v230_v17 = vadd.f32 %v229_v61, %v223_v60  ;;  %v346_v54 = vpop.permute.xlu0 %345 }
  0xca   :  { %v237_v0 = vadd.f32 %v236_v62, %v230_v17 }
  0xcc   :  { %v244_v4 = vadd.f32 %v243_v63, %v237_v0 }
  0xce   :  { %v248_v13 = vpop.permute.xlu1 %247 }
  0xcf   :  { %v250_v7 = vadd.f32 %v248_v13, %v244_v4 }
  0xd0   :  { %v307_v20 = vpop.permute.xlu2 %306  ;;  %v389_v13 = vpop.permute.xlu0 %388 }
  0xd1   :  { %543 = vtanh.f32 %v250_v7 }
  0xd7   :  { %v263_v28 = vpop.permute.xlu1 %262  ;;  %v544_v10 = vpop.eup %543 }
  0xd8   :  { %v259_v11 = vperm.slane %v544_v10, 0  ;;  %v265_v15 = vperm.slane %v544_v10, 1  ;;  %v272_v21 = vperm.slane %v544_v10, 2 }
  0xd9   :  { %v329_v27 = vpop.permute.xlu2 %328 }
  0xda   :  { %v260_v18 = vmul.f32 %v259_v11, %v257_v57  ;;  %v266_v19 = vmul.f32 %v265_v15, %v263_v28  ;;  %v273_v22 = vmul.f32 %v272_v21, %v270_v5 }
  0xdc   :  { %v267_v3 = vadd.f32 %v266_v19, %v260_v18 }
  0xde   :  { %v274_v23 = vadd.f32 %v273_v22, %v267_v3 }
  0xe0   :  { %v291_v16 = vpop.permute.xlu1 %290  ;;  %v280_v26 = vadd.f32 %v278_v25, %v274_v23 }
  0xe2   :  { %v282_v29 = vmul.f32 0.01, %v280_v26  ;;  %vm281_vm3 = vcmp.gt.f32.partialorder %v280_v26, 0.0  ;;  %v342_v31 = vpop.permute.xlu2 %341 }
  0xe4   :  { %v283_v30 = vsel %vm281_vm3, %v280_v26, %v282_v29 }
  0xe5   :  { %v298_v32 = vperm.slane %v283_v30, 0  ;;  %v309_v2 = vperm.slane %v283_v30, 1  ;;  %v322_v35 = vperm.slane %v283_v30, 2  ;;  %v335_v39 = vperm.slane %v283_v30, 3 }
  0xe6   :  { %v348_v44 = vperm.slane %v283_v30, 4  ;;  %v361_v6 = vperm.slane %v283_v30, 5 }
  0xe7   :  { %v299_v36 = vmul.f32 %v298_v32, %v291_v16  ;;  %v323_v40 = vmul.f32 %v322_v35, %v316_v38  ;;  %v336_v43 = vmul.f32 %v335_v39, %v329_v27  ;;  %v300_v9 = vmul.f32 %v298_v32, %v296_v8  ;;  %v423_v27 = vpop.permute.xlu0 %422 }
  0xe8   :  { %v349_v46 = vmul.f32 %v348_v44, %v342_v31  ;;  %v311_v52 = vmul.f32 %v309_v2, %v307_v20  ;;  %v350_v4 = vmul.f32 %v348_v44, %v346_v54 }
  0xe9   :  { %v303_v24 = vpop.permute.xlu1 %302 }
  0xea   :  { %v310_v33 = vmul.f32 %v309_v2, %v303_v24  ;;  %v313_v57 = vadd.f32 %v311_v52, %v300_v9 }
  0xeb   :  { %v359_v41 = vpop.permute.xlu2 %358 }
  0xec   :  { %v312_v37 = vadd.f32 %v310_v33, %v299_v36  ;;  %v363_v15 = vmul.f32 %v361_v6, %v359_v41 }
  0xee   :  { %v325_v42 = vadd.f32 %v323_v40, %v312_v37 }
  0xf0   :  { %v338_v45 = vadd.f32 %v336_v43, %v325_v42 }
  0xf2   :  { %v320_v1 = vpop.permute.xlu1 %319  ;;  %v351_v49 = vadd.f32 %v349_v46, %v338_v45 }
  0xf3   :  { %v324_v55 = vmul.f32 %v322_v35, %v320_v1 }
  0xf4   :  { %v374_v48 = vpop.permute.xlu2 %373 }
  0xf5   :  { %v326_v61 = vadd.f32 %v324_v55, %v313_v57 }
  0xfb   :  { %v333_v34 = vpop.permute.xlu1 %332 }
  0xfc   :  { %v337_v58 = vmul.f32 %v335_v39, %v333_v34 }
  0xfd   :  { %v402_v56 = vpop.permute.xlu2 %401 }
  0xfe   :  { %v339_v63 = vadd.f32 %v337_v58, %v326_v61 }
 0x100   :  { %v352_v28 = vadd.f32 %v350_v4, %v339_v63 }
 0x102   :  { %v365_v20 = vadd.f32 %v363_v15, %v352_v28 }
 0x104   :  { %v355_v12 = vpop.permute.xlu1 %354  ;;  %v377_v23 = vadd.f32 %v374_v48, %v365_v20 }
 0x105   :  { %v362_v47 = vmul.f32 %v361_v6, %v355_v12  ;;  %v459_v6 = vpop.permute.xlu0 %458 }
 0x106   :  { %v416_v8 = vpop.permute.xlu2 %415  ;;  %v381_v31 = vmul.f32 0.01, %v377_v23  ;;  %vm379_vm5 = vcmp.gt.f32.partialorder %v377_v23, 0.0 }
 0x107   :  { %v364_v50 = vadd.f32 %v362_v47, %v351_v49 }
 0x108   :  { %v383_v35 = vsel %vm379_vm5, %v377_v23, %v381_v31 }
 0x109   :  { %v446_v38 = vperm.slane %v383_v35, 0  ;;  %v453_v41 = vperm.slane %v383_v35, 1 }
 0x10d   :  { %v369_v51 = vpop.permute.xlu1 %368 }
 0x10e   :  { %v376_v14 = vadd.f32 %v369_v51, %v364_v50 }
 0x10f   :  { %v437_v26 = vpop.permute.xlu2 %436 }
 0x110   :  { %v380_v53 = vmul.f32 0.01, %v376_v14  ;;  %vm378_vm4 = vcmp.gt.f32.partialorder %v376_v14, 0.0 }
 0x112   :  { %v382_v59 = vsel %vm378_vm4, %v376_v14, %v380_v53 }
 0x113   :  { %v391_v17 = vperm.slane %v382_v59, 0  ;;  %v397_v62 = vperm.slane %v382_v59, 1  ;;  %v404_v7 = vperm.slane %v382_v59, 2  ;;  %v411_v11 = vperm.slane %v382_v59, 3 }
 0x114   :  { %v418_v3 = vperm.slane %v382_v59, 4  ;;  %v425_v24 = vperm.slane %v382_v59, 5  ;;  %v432_v30 = vperm.slane %v382_v59, 6  ;;  %v439_v33 = vperm.slane %v382_v59, 7 }
 0x115   :  { %v392_v5 = vmul.f32 %v391_v17, %v389_v13  ;;  %v405_v18 = vmul.f32 %v404_v7, %v402_v56 }
 0x116   :  { %v395_v60 = vpop.permute.xlu1 %394  ;;  %v419_v25 = vmul.f32 %v418_v3, %v416_v8  ;;  %v426_v32 = vmul.f32 %v425_v24, %v423_v27  ;;  %v440_v37 = vmul.f32 %v439_v33, %v437_v26 }
 0x117   :  { %v398_v0 = vmul.f32 %v397_v62, %v395_v60 }
 0x118   :  { %v451_v39 = vpop.permute.xlu2 %450 }
 0x119   :  { %v399_v10 = vadd.f32 %v398_v0, %v392_v5  ;;  %v454_v44 = vmul.f32 %v453_v41, %v451_v39 }
 0x11b   :  { %v406_v21 = vadd.f32 %v405_v18, %v399_v10 }
 0x11f   :  { %v409_v16 = vpop.permute.xlu1 %408 }
 0x120   :  { %v412_v19 = vmul.f32 %v411_v11, %v409_v16 }
 0x122   :  { %v413_v22 = vadd.f32 %v412_v19, %v406_v21 }
 0x124   :  { %v420_v29 = vadd.f32 %v419_v25, %v413_v22 }
 0x126   :  { %v427_v34 = vadd.f32 %v426_v32, %v420_v29 }
 0x128   :  { %v430_v1 = vpop.permute.xlu1 %429 }
 0x129   :  { %v433_v2 = vmul.f32 %v432_v30, %v430_v1 }
 0x12b   :  { %v434_v36 = vadd.f32 %v433_v2, %v427_v34 }
 0x12d   :  { %v441_v42 = vadd.f32 %v440_v37, %v434_v36 }
 0x131   :  { %v444_v40 = vpop.permute.xlu1 %443 }
 0x132   :  { %v447_v43 = vmul.f32 %v446_v38, %v444_v40 }
 0x134   :  { %v448_v12 = vadd.f32 %v447_v43, %v441_v42 }
 0x136   :  { %v455_v45 = vadd.f32 %v454_v44, %v448_v12 }
 0x138   :  { %v461_v46 = vadd.f32 %v459_v6, %v455_v45 }
 0x13a   :  { %545 = vtanh.f32 %v461_v46 }
 0x140   :  { %v546_v47 = vpop.eup %545 }
 0x141   :  { %463 = vst [vmem:[#allocation2] sm:$0xf] %v546_v47 }
 0x142   :  { %474 = dma.vmem_to_hbm [thread:$0]  %s470_s30, 64, %s472_s1, [#allocation3]  }
 0x143   :  { %571 = dma.done.wait [#allocation3], 64  }
 0x144   :  { %572 = vsyncadd [#allocation3], 4294967232 }
 0x145   :  { %479 = vsyncpa [#allocation3], 1 }

</bundles_post_ra>
